<compile_context>
chip_gen: v5e
topology: v5e:2x2
jax: 0.10.0
libtpu: 0.0.40
codegen_flags: <defaults>
</compile_context>

<pallas_src>
import jax
import jax.numpy as jnp
from jax.experimental import pallas as pl
from jax.experimental.pallas import tpu as pltpu


def encoder_kernel(x_ref, w1_ref, b1_ref, wh_ref, bh_ref, out_ref):
    # hidden layer: MXU matmul (f32 accumulate) + f32 bias + ReLU on the VPU
    h = jnp.dot(x_ref[...], w1_ref[...], preferred_element_type=jnp.float32)
    h = jnp.maximum(h + b1_ref[...], 0.0)
    # fused mu/logvar head: single lane-dense matmul into a (TB, 128) slab
    out = jnp.dot(h.astype(wh_ref.dtype), wh_ref[...],
                  preferred_element_type=jnp.float32) + bh_ref[...]
    out_ref[...] = out.astype(out_ref.dtype)


def _round_up(n, m):
    return ((n + m - 1) // m) * m


def init_encoder_params(key, in_features=28 * 28, e_hidden=200, latent_dim=2,
                        dtype=jnp.float32):
    """Deterministic init mimicking torch.nn.Linear default U(-1/sqrt(fan_in), +)."""
    ks = jax.random.split(key, 6)

    def linear(kw, kb, fan_in, fan_out):
        bound = 1.0 / jnp.sqrt(jnp.asarray(fan_in, dtype))
        # stored as (in, out) so the kernel does x @ W directly
        w = jax.random.uniform(kw, (fan_in, fan_out), dtype, -bound, bound)
        b = jax.random.uniform(kb, (1, fan_out), dtype, -bound, bound)
        return w, b

    w1, b1 = linear(ks[0], ks[1], in_features, e_hidden)
    wmu, bmu = linear(ks[2], ks[3], e_hidden, latent_dim)
    wlv, blv = linear(ks[4], ks[5], e_hidden, latent_dim)
    return (w1, b1, wmu, bmu, wlv, blv)


def encoder_forward(x, params, compute_dtype=jnp.float32):
    """x: (B, C, H, W).  Returns (mu, logvar), each (B, latent_dim), float32."""
    w1, b1, wmu, bmu, wlv, blv = params
    B = x.shape[0]
    x2d = x.reshape(B, -1)  # same flattening as torch .view(B, -1)
    in_features, e_hidden = w1.shape
    latent_dim = wmu.shape[1]
    assert x2d.shape[1] == in_features

    # ---- lane-aligned padded shapes -------------------------------------
    K_pad = _round_up(in_features, 128)          # 784 -> 896
    H_pad = _round_up(e_hidden, 128)             # 200 -> 256
    N = 2 * latent_dim                           # fused mu|logvar columns
    N_pad = _round_up(N, 128)                    # lane-dense output slab

    TB = 256 if B > 256 else _round_up(B, 8)     # batch tile (sublane-aligned)
    B_pad = _round_up(B, TB)

    f32 = jnp.float32
    # Zero-pad everything (padded rows/cols are exactly 0, so they contribute
    # nothing to h or the heads).
    x_p = jnp.zeros((B_pad, K_pad), compute_dtype)
    x_p = x_p.at[:B, :in_features].set(x2d.astype(compute_dtype))
    w1_p = jnp.zeros((K_pad, H_pad), compute_dtype)
    w1_p = w1_p.at[:in_features, :e_hidden].set(w1.astype(compute_dtype))
    b1_p = jnp.zeros((1, H_pad), f32).at[:, :e_hidden].set(b1.astype(f32))

    wh = jnp.concatenate([wmu, wlv], axis=1)     # (e_hidden, 2*latent_dim)
    bh = jnp.concatenate([bmu, blv], axis=1)     # (1, 2*latent_dim)
    wh_p = jnp.zeros((H_pad, N_pad), compute_dtype)
    wh_p = wh_p.at[:e_hidden, :N].set(wh.astype(compute_dtype))
    bh_p = jnp.zeros((1, N_pad), f32).at[:, :N].set(bh.astype(f32))

    itemsize = jnp.dtype(compute_dtype).itemsize
    cost = pl.CostEstimate(
        flops=2 * B_pad * K_pad * H_pad + 2 * B_pad * H_pad * N_pad,
        transcendentals=0,
        bytes_accessed=(x_p.size * itemsize + w1_p.size * itemsize
                        + wh_p.size * itemsize
                        + b1_p.size * 4 + bh_p.size * 4 + B_pad * N_pad * 4))

    grid = (B_pad // TB,)
    out = pl.pallas_call(
        encoder_kernel,
        grid=grid,
        in_specs=[
            pl.BlockSpec((TB, K_pad), lambda i: (i, 0)),     # x tile (pipelined)
            pl.BlockSpec((K_pad, H_pad), lambda i: (0, 0)),  # W1 resident
            pl.BlockSpec((1, H_pad), lambda i: (0, 0)),      # b1 resident
            pl.BlockSpec((H_pad, N_pad), lambda i: (0, 0)),  # fused head W resident
            pl.BlockSpec((1, N_pad), lambda i: (0, 0)),      # fused head b resident
        ],
        out_specs=pl.BlockSpec((TB, N_pad), lambda i: (i, 0)),
        out_shape=jax.ShapeDtypeStruct((B_pad, N_pad), f32),
        compiler_params=pltpu.CompilerParams(
            dimension_semantics=("parallel",)),
        cost_estimate=cost,
    )(x_p, w1_p, b1_p, wh_p, bh_p)

    mu = out[:B, :latent_dim]
    logvar = out[:B, latent_dim:N]
    return mu, logvar


def encoder_ref(x, params):
    """Pure-JAX reference for correctness check."""
    w1, b1, wmu, bmu, wlv, blv = params
    x2d = x.reshape(x.shape[0], -1)
    h = jnp.maximum(x2d @ w1 + b1, 0.0)
    return h @ wmu + bmu, h @ wlv + blv


if __name__ == "__main__":
    key = jax.random.PRNGKey(0)
    k_param, k_x = jax.random.split(key)

    B, C, H, W = 8, 1, 28, 28           # MNIST-like, matches in_features=28*28
    in_features, e_hidden, latent_dim = C * H * W, 200, 2

    params = init_encoder_params(k_param, in_features, e_hidden, latent_dim)
    x = jax.random.normal(k_x, (B, C, H, W), dtype=jnp.float32)

    mu_ref, logvar_ref = encoder_ref(x, params)

    # f32 path (exact-ish)
    mu, logvar = encoder_forward(x, params, compute_dtype=jnp.float32)
    mu = jax.block_until_ready(mu)
    logvar = jax.block_until_ready(logvar)
    assert mu.shape == (B, latent_dim) and logvar.shape == (B, latent_dim)
    assert jnp.allclose(mu, mu_ref, atol=1e-4, rtol=1e-4)
    assert jnp.allclose(logvar, logvar_ref, atol=1e-4, rtol=1e-4)

    # bf16 inputs / weights with f32 accumulate (fast path on v6e / v7x)
    mu_bf, logvar_bf = encoder_forward(x, params, compute_dtype=jnp.bfloat16)
    mu_bf = jax.block_until_ready(mu_bf)
    logvar_bf = jax.block_until_ready(logvar_bf)
    assert jnp.allclose(mu_bf, mu_ref, atol=5e-2, rtol=5e-2)
    assert jnp.allclose(logvar_bf, logvar_ref, atol=5e-2, rtol=5e-2)

    print("KERNEL_OK")
</pallas_src>

<mosaic_0001>
module attributes {stable_mosaic.version = 11 : i64} {
  func.func @encoder_kernel(%arg0: i32, %arg1: memref<8x896xf32, #tpu.memory_space<vmem>>, %arg2: memref<896x256xf32, #tpu.memory_space<vmem>>, %arg3: memref<1x256xf32, #tpu.memory_space<vmem>>, %arg4: memref<256x128xf32, #tpu.memory_space<vmem>>, %arg5: memref<1x128xf32, #tpu.memory_space<vmem>>, %arg6: memref<8x128xf32, #tpu.memory_space<vmem>>) attributes {dimension_semantics = [#tpu.dimension_semantics<parallel>], iteration_bounds = array<i64: 1>, scalar_prefetch = 0 : i64, scratch_operands = 0 : i64, tpu.core_type = #tpu.core_type<tc>, window_params = [{transform_indices = @transform_0, window_bounds = array<i64: 8, 896>}, {pipeline_mode = #tpu.pipeline_mode<synchronous>, transform_indices = @transform_1, window_bounds = array<i64: 896, 256>}, {pipeline_mode = #tpu.pipeline_mode<synchronous>, transform_indices = @transform_2, window_bounds = array<i64: 1, 256>}, {pipeline_mode = #tpu.pipeline_mode<synchronous>, transform_indices = @transform_3, window_bounds = array<i64: 256, 128>}, {pipeline_mode = #tpu.pipeline_mode<synchronous>, transform_indices = @transform_4, window_bounds = array<i64: 1, 128>}, {transform_indices = @transform_5, window_bounds = array<i64: 8, 128>}]} {
    %c0 = arith.constant 0 : index
    %c0_0 = arith.constant 0 : index
    %0 = vector.load %arg1[%c0, %c0_0] : memref<8x896xf32, #tpu.memory_space<vmem>>, vector<8x896xf32>
    %c0_1 = arith.constant 0 : index
    %c0_2 = arith.constant 0 : index
    %1 = vector.load %arg2[%c0_1, %c0_2] : memref<896x256xf32, #tpu.memory_space<vmem>>, vector<896x256xf32>
    %cst = arith.constant dense<0.000000e+00> : vector<8x256xf32>
    %2 = tpu.matmul %0, %1, %cst {dimension_numbers = #tpu.dot_dimension_numbers<[1], [0], [0], [1], [0, 0, 1, 1], [], []>} : vector<8x896xf32>, vector<896x256xf32>, vector<8x256xf32> -> vector<8x256xf32>
    %c0_3 = arith.constant 0 : index
    %c0_4 = arith.constant 0 : index
    %3 = vector.load %arg3[%c0_3, %c0_4] : memref<1x256xf32, #tpu.memory_space<vmem>>, vector<1x256xf32>
    %4 = vector.broadcast %3 : vector<1x256xf32> to vector<8x256xf32>
    %5 = arith.addf %2, %4 : vector<8x256xf32>
    %cst_5 = arith.constant 0.000000e+00 : f32
    %6 = vector.broadcast %cst_5 : f32 to vector<8x256xf32>
    %7 = arith.maximumf %5, %6 : vector<8x256xf32>
    %c0_6 = arith.constant 0 : index
    %c0_7 = arith.constant 0 : index
    %8 = vector.load %arg4[%c0_6, %c0_7] : memref<256x128xf32, #tpu.memory_space<vmem>>, vector<256x128xf32>
    %cst_8 = arith.constant dense<0.000000e+00> : vector<8x128xf32>
    %9 = tpu.matmul %7, %8, %cst_8 {dimension_numbers = #tpu.dot_dimension_numbers<[1], [0], [0], [1], [0, 0, 1, 1], [], []>} : vector<8x256xf32>, vector<256x128xf32>, vector<8x128xf32> -> vector<8x128xf32>
    %c0_9 = arith.constant 0 : index
    %c0_10 = arith.constant 0 : index
    %10 = vector.load %arg5[%c0_9, %c0_10] : memref<1x128xf32, #tpu.memory_space<vmem>>, vector<1x128xf32>
    %11 = vector.broadcast %10 : vector<1x128xf32> to vector<8x128xf32>
    %12 = arith.addf %9, %11 : vector<8x128xf32>
    %c0_11 = arith.constant 0 : index
    %c0_12 = arith.constant 0 : index
    %13 = vector.load %arg6[%c0_11, %c0_12] : memref<8x128xf32, #tpu.memory_space<vmem>>, vector<8x128xf32>
    tpu.vector_store %arg6[%c0_11, %c0_12], %12 {strides = array<i32>} : memref<8x128xf32, #tpu.memory_space<vmem>>, vector<8x128xf32>,
    return
  }
  func.func @transform_0(%arg0: i32) -> (i32, i32) {
    %c0_i32 = arith.constant 0 : i32
    %c0_i32_0 = arith.constant 0 : i32
    return %arg0, %c0_i32 : i32, i32
  }
  func.func @transform_1(%arg0: i32) -> (i32, i32) {
    %c0_i32 = arith.constant 0 : i32
    %c0_i32_0 = arith.constant 0 : i32
    %c0_i32_1 = arith.constant 0 : i32
    return %c0_i32, %c0_i32_0 : i32, i32
  }
  func.func @transform_2(%arg0: i32) -> (i32, i32) {
    %c0_i32 = arith.constant 0 : i32
    %c0_i32_0 = arith.constant 0 : i32
    %c0_i32_1 = arith.constant 0 : i32
    return %c0_i32, %c0_i32_0 : i32, i32
  }
  func.func @transform_3(%arg0: i32) -> (i32, i32) {
    %c0_i32 = arith.constant 0 : i32
    %c0_i32_0 = arith.constant 0 : i32
    %c0_i32_1 = arith.constant 0 : i32
    return %c0_i32, %c0_i32_0 : i32, i32
  }
  func.func @transform_4(%arg0: i32) -> (i32, i32) {
    %c0_i32 = arith.constant 0 : i32
    %c0_i32_0 = arith.constant 0 : i32
    %c0_i32_1 = arith.constant 0 : i32
    return %c0_i32, %c0_i32_0 : i32, i32
  }
  func.func @transform_5(%arg0: i32) -> (i32, i32) {
    %c0_i32 = arith.constant 0 : i32
    %c0_i32_0 = arith.constant 0 : i32
    return %arg0, %c0_i32 : i32, i32
  }
}

</mosaic_0001>

<bundles_post_ra>
// kernel: tpu_custom_call.1
= control target key start
LH: loop header
LB: loop body
LE: loop exit
PB: predicated region body
PF: predicated region fallthrough
CT: control target
= control target key end

     0   :  { %10 = vsyncpa [#allocation3], 0  ;;  %s918_s0 = inlined_call_operand.hbm [shape: f32[8,896], index: 0, kind: input, shape index: {}]   ;;  %s919_s1 = inlined_call_operand.hbm [shape: f32[896,256], index: 1, kind: input, shape index: {}]   ;;  %s920_s2 = inlined_call_operand.hbm [shape: f32[1,256], index: 2, kind: input, shape index: {}]   ;;  %s921_s3 = inlined_call_operand.hbm [shape: f32[256,128], index: 3, kind: input, shape index: {}]   ;;  %s922_s4 = inlined_call_operand.vmem [shape: f32[1,128], index: 4, kind: input, shape index: {}]   ;;  %s923_s5 = inlined_call_operand.hbm [shape: f32[8,128], index: 5, kind: output, shape index: {}]  }
   0x1   :  { %11 = vsyncpa [#allocation6], 0 }
   0x2   :  { %12 = vsyncpa [#allocation9], 0  ;;  %s29_s20 = sshll.u32 %s919_s1, 4  ;;  %s30_s20 = int_to_ptr.hbm [resolvable:$true] %s29_s20 }
   0x3   :  { %13 = vsyncpa [#allocation4], 0  ;;  %s833_s21 = smov [#allocation5]   ;;  %s19_s25 = sshll.u32 %s918_s0, 4  ;;  %s20_s25 = int_to_ptr.hbm [resolvable:$true] %s19_s25 }
   0x4   :  { %s31_s22 = sshll.u32 %s833_s21, 4  ;;  %s834_s26 = smov 256   ;;  %s32_s22 = int_to_ptr.vmem [resolvable:$true] %s31_s22 }
   0x5   :  { %s835_s27 = smov 16   ;;  %s836_s28 = smov [#allocation2]  }
   0x6   :  { %37 = dma.hbm_to_vmem [thread:$0]  %s30_s20, 28672, %s32_s22, [#allocation6], %s834_s26, %s834_s26, %s835_s27  }
   0x7   :  { %s21_s29 = sshll.u32 %s836_s28, 4  ;;  %s43_s7 = sshll.u32 %s920_s2, 4  ;;  %s22_s29 = int_to_ptr.vmem [resolvable:$true] %s21_s29  ;;  %s44_s7 = int_to_ptr.hbm [resolvable:$true] %s43_s7 }
   0x8   :  { %24 = dma.hbm_to_vmem [thread:$0]  %s20_s25, 896, %s22_s29, [#allocation3]  }
   0x9   :  { %s53_s9 = sshll.u32 %s921_s3, 4  ;;  %s837_s10 = smov [#allocation7]   ;;  %s54_s9 = int_to_ptr.hbm [resolvable:$true] %s53_s9 }
   0xa   :  { %s45_s11 = sshll.u32 %s837_s10, 4  ;;  %s838_s0 = smov [#allocation8]   ;;  %s46_s11 = int_to_ptr.vmem [resolvable:$true] %s45_s11 }
   0xb   :  { %48 = dma.hbm_to_vmem [thread:$0]  %s44_s7, 32, %s46_s11, [#allocation6]  }
   0xc   :  { %s55_s12 = sshll.u32 %s838_s0, 4  ;;  %s839_s13 = smov 128   ;;  %s56_s12 = int_to_ptr.vmem [resolvable:$true] %s55_s12 }
   0xd   :  { %s840_s14 = smov 8  }
   0xe   :  { %61 = dma.hbm_to_vmem [thread:$0]  %s54_s9, 4096, %s56_s12, [#allocation9], %s839_s13, %s839_s13, %s840_s14  }
   0xf   :  { %825 = dma.done.wait [#allocation3], 896  }
  0x10   :  { %826 = vsyncadd [#allocation3], 4294966400 }
  0x11   :  { %827 = dma.done.wait [#allocation6], 28704  }
  0x12   :  { %828 = vsyncadd [#allocation6], 4294938592 }
  0x13   :  { %829 = dma.done.wait [#allocation9], 4096  }
  0x14   :  { %830 = vsyncadd [#allocation9], 4294963200  ;;  %v117_v0 = vld [vmem:[#allocation5 + $0xf0] sm:$0xff]  ;;  %v115_v1 = vld [vmem:[#allocation5 + $0xe0] sm:$0xff]  ;;  %s841_s15 = smov [#allocation10]   ;;  %s683_s19 = sshll.u32 %s923_s5, 4  ;;  %s684_s19 = int_to_ptr.hbm [resolvable:$true] %s683_s19 }
  0x15   :  { %v149_v2 = vld [vmem:[#allocation5 + $0x1f0] sm:$0xff]  ;;  %317 = vmatpush.msra.mxu0 %v117_v0  ;;  %v147_v3 = vld [vmem:[#allocation5 + $0x1e0] sm:$0xff]  ;;  %s681_s16 = sshll.u32 %s841_s15, 4  ;;  %s682_s16 = int_to_ptr.vmem [resolvable:$true] %s681_s16 }
  0x16   :  { %337 = vmatpush.msra.mxu1 %v149_v2  ;;  %v113_v4 = vld [vmem:[#allocation5 + $0xd0] sm:$0xff]  ;;  %v179_v7 = vld [vmem:[#allocation5 + $0x2e0] sm:$0xff] }
  0x17   :  { %v145_v5 = vld [vmem:[#allocation5 + $0x1d0] sm:$0xff]  ;;  %318 = vmatpush.msra.mxu0 %v115_v1  ;;  %v111_v8 = vld [vmem:[#allocation5 + $0xc0] sm:$0xff] }
  0x18   :  { %v181_v6 = vld [vmem:[#allocation5 + $0x2f0] sm:$0xff]  ;;  %338 = vmatpush.msra.mxu1 %v147_v3  ;;  %v143_v9 = vld [vmem:[#allocation5 + $0x1c0] sm:$0xff] }
  0x19   :  { %357 = vmatpush.msra.mxu2 %v181_v6  ;;  %319 = vmatpush.msra.mxu0 %v113_v4  ;;  %v177_v10 = vld [vmem:[#allocation5 + $0x2d0] sm:$0xff]  ;;  %v175_v13 = vld [vmem:[#allocation5 + $0x2c0] sm:$0xff] }
  0x1a   :  { %339 = vmatpush.msra.mxu1 %v145_v5  ;;  %v109_v11 = vld [vmem:[#allocation5 + $0xb0] sm:$0xff]  ;;  %v107_v14 = vld [vmem:[#allocation5 + $0xa0] sm:$0xff] }
  0x1b   :  { %358 = vmatpush.msra.mxu2 %v179_v7  ;;  %v141_v12 = vld [vmem:[#allocation5 + $0x1b0] sm:$0xff]  ;;  %320 = vmatpush.msra.mxu0 %v111_v8  ;;  %v139_v15 = vld [vmem:[#allocation5 + $0x1a0] sm:$0xff] }
  0x1c   :  { %340 = vmatpush.msra.mxu1 %v143_v9  ;;  %v173_v16 = vld [vmem:[#allocation5 + $0x2b0] sm:$0xff]  ;;  %v171_v20 = vld [vmem:[#allocation5 + $0x2a0] sm:$0xff] }
  0x1d   :  { %359 = vmatpush.msra.mxu2 %v177_v10  ;;  %321 = vmatpush.msra.mxu0 %v109_v11  ;;  %v105_v17 = vld [vmem:[#allocation5 + $0x90] sm:$0xff]  ;;  %v103_v21 = vld [vmem:[#allocation5 + $0x80] sm:$0xff] }
  0x1e   :  { %341 = vmatpush.msra.mxu1 %v141_v12  ;;  %v137_v18 = vld [vmem:[#allocation5 + $0x190] sm:$0xff]  ;;  %v135_v22 = vld [vmem:[#allocation5 + $0x180] sm:$0xff] }
  0x1f   :  { %360 = vmatpush.msra.mxu2 %v175_v13  ;;  %v213_v19 = vld [vmem:[#allocation5 + $0x3f0] sm:$0xff]  ;;  %322 = vmatpush.msra.mxu0 %v107_v14  ;;  %v211_v23 = vld [vmem:[#allocation5 + $0x3e0] sm:$0xff] }
  0x20   :  { %342 = vmatpush.msra.mxu1 %v139_v15  ;;  %377 = vmatpush.msra.mxu3 %v213_v19  ;;  %v169_v24 = vld [vmem:[#allocation5 + $0x290] sm:$0xff]  ;;  %v167_v28 = vld [vmem:[#allocation5 + $0x280] sm:$0xff]  ;;  %v118_v19 = vld [vmem:[#allocation5 + $0xf8] sm:$0xff] }
  0x21   :  { %361 = vmatpush.msra.mxu2 %v173_v16  ;;  %323 = vmatpush.msra.mxu0 %v105_v17  ;;  %v209_v25 = vld [vmem:[#allocation5 + $0x3d0] sm:$0xff]  ;;  %v207_v29 = vld [vmem:[#allocation5 + $0x3c0] sm:$0xff] }
  0x22   :  { %343 = vmatpush.msra.mxu1 %v137_v18  ;;  %v101_v26 = vld [vmem:[#allocation5 + $0x70] sm:$0xff]  ;;  %378 = vmatpush.msra.mxu3 %v211_v23  ;;  %v99_v30 = vld [vmem:[#allocation5 + $0x60] sm:$0xff]  ;;  %v116_v23 = vld [vmem:[#allocation5 + $0xe8] sm:$0xff] }
  0x23   :  { %362 = vmatpush.msra.mxu2 %v171_v20  ;;  %v133_v27 = vld [vmem:[#allocation5 + $0x170] sm:$0xff]  ;;  %324 = vmatpush.msra.mxu0 %v103_v21  ;;  %v131_v31 = vld [vmem:[#allocation5 + $0x160] sm:$0xff] }
  0x24   :  { %344 = vmatpush.msra.mxu1 %v135_v22  ;;  %379 = vmatpush.msra.mxu3 %v209_v25  ;;  %v165_v32 = vld [vmem:[#allocation5 + $0x270] sm:$0xff]  ;;  %v163_v36 = vld [vmem:[#allocation5 + $0x260] sm:$0xff] }
  0x25   :  { %363 = vmatpush.msra.mxu2 %v169_v24  ;;  %325 = vmatpush.msra.mxu0 %v101_v26  ;;  %v205_v33 = vld [vmem:[#allocation5 + $0x3b0] sm:$0xff]  ;;  %v203_v37 = vld [vmem:[#allocation5 + $0x3a0] sm:$0xff] }
  0x26   :  { %345 = vmatpush.msra.mxu1 %v133_v27  ;;  %v97_v34 = vld [vmem:[#allocation5 + $0x50] sm:$0xff]  ;;  %380 = vmatpush.msra.mxu3 %v207_v29  ;;  %v95_v38 = vld [vmem:[#allocation5 + $0x40] sm:$0xff]  ;;  %v114_v27 = vld [vmem:[#allocation5 + $0xd8] sm:$0xff] }
  0x27   :  { %364 = vmatpush.msra.mxu2 %v167_v28  ;;  %v129_v35 = vld [vmem:[#allocation5 + $0x150] sm:$0xff]  ;;  %326 = vmatpush.msra.mxu0 %v99_v30  ;;  %v127_v39 = vld [vmem:[#allocation5 + $0x140] sm:$0xff] }
  0x28   :  { %346 = vmatpush.msra.mxu1 %v131_v31  ;;  %381 = vmatpush.msra.mxu3 %v205_v33  ;;  %v161_v40 = vld [vmem:[#allocation5 + $0x250] sm:$0xff]  ;;  %v159_v44 = vld [vmem:[#allocation5 + $0x240] sm:$0xff]  ;;  %v112_v31 = vld [vmem:[#allocation5 + $0xc8] sm:$0xff] }
  0x29   :  { %365 = vmatpush.msra.mxu2 %v165_v32  ;;  %327 = vmatpush.msra.mxu0 %v97_v34  ;;  %v201_v41 = vld [vmem:[#allocation5 + $0x390] sm:$0xff]  ;;  %v199_v45 = vld [vmem:[#allocation5 + $0x380] sm:$0xff] }
  0x2a   :  { %347 = vmatpush.msra.mxu1 %v129_v35  ;;  %v93_v42 = vld [vmem:[#allocation5 + $0x30] sm:$0xff]  ;;  %382 = vmatpush.msra.mxu3 %v203_v37  ;;  %v91_v46 = vld [vmem:[#allocation5 + $0x20] sm:$0xff]  ;;  %v884_v35 = vld [vmem:[#allocation2] sm:$0xff] }
  0x2b   :  { %366 = vmatpush.msra.mxu2 %v163_v36  ;;  %v125_v43 = vld [vmem:[#allocation5 + $0x130] sm:$0xff]  ;;  %328 = vmatpush.msra.mxu0 %v95_v38  ;;  %v123_v47 = vld [vmem:[#allocation5 + $0x120] sm:$0xff] }
  0x2c   :  { %348 = vmatpush.msra.mxu1 %v127_v39  ;;  %383 = vmatpush.msra.mxu3 %v201_v41  ;;  %v157_v48 = vld [vmem:[#allocation5 + $0x230] sm:$0xff]  ;;  %v155_v52 = vld [vmem:[#allocation5 + $0x220] sm:$0xff] }
  0x2d   :  { %367 = vmatpush.msra.mxu2 %v161_v40  ;;  %329 = vmatpush.msra.mxu0 %v93_v42  ;;  %v197_v49 = vld [vmem:[#allocation5 + $0x370] sm:$0xff]  ;;  %v195_v53 = vld [vmem:[#allocation5 + $0x360] sm:$0xff] }
  0x2e   :  { %349 = vmatpush.msra.mxu1 %v125_v43  ;;  %v89_v50 = vld [vmem:[#allocation5 + $0x10] sm:$0xff]  ;;  %384 = vmatpush.msra.mxu3 %v199_v45  ;;  %v87_v54 = vld [vmem:[#allocation5] sm:$0xff]  ;;  %v110_v43 = vld [vmem:[#allocation5 + $0xb8] sm:$0xff] }
  0x2f   :  { %368 = vmatpush.msra.mxu2 %v159_v44  ;;  %v121_v51 = vld [vmem:[#allocation5 + $0x110] sm:$0xff]  ;;  %330 = vmatpush.msra.mxu0 %v91_v46  ;;  %v119_v55 = vld [vmem:[#allocation5 + $0x100] sm:$0xff] }
  0x30   :  { %350 = vmatpush.msra.mxu1 %v123_v47  ;;  %385 = vmatpush.msra.mxu3 %v197_v49  ;;  %v245_v56 = vld [vmem:[#allocation5 + $0x4f0] sm:$0xff]  ;;  %v243_v60 = vld [vmem:[#allocation5 + $0x4e0] sm:$0xff]  ;;  %v892_v49 = vld [vmem:[#allocation2 + $0x10] sm:$0xff] }
  0x31   :  { %369 = vmatpush.msra.mxu2 %v157_v48  ;;  %331 = vmatpush.msra.mxu0 %v89_v50  ;;  %v277_v57 = vld [vmem:[#allocation5 + $0x5f0] sm:$0xff]  ;;  %v275_v61 = vld [vmem:[#allocation5 + $0x5e0] sm:$0xff] }
  0x32   :  { %351 = vmatpush.msra.mxu1 %v121_v51  ;;  %v153_v58 = vld [vmem:[#allocation5 + $0x210] sm:$0xff]  ;;  %386 = vmatpush.msra.mxu3 %v195_v53  ;;  %v151_v62 = vld [vmem:[#allocation5 + $0x200] sm:$0xff]  ;;  %v108_v53 = vld [vmem:[#allocation5 + $0xa8] sm:$0xff] }
  0x33   :  { %370 = vmatpush.msra.mxu2 %v155_v52  ;;  %v193_v59 = vld [vmem:[#allocation5 + $0x350] sm:$0xff]  ;;  %332 = vmatpush.msra.mxu0 %v87_v54  ;;  %v191_v63 = vld [vmem:[#allocation5 + $0x340] sm:$0xff]  ;;  %v150_v54 = vld [vmem:[#allocation5 + $0x1f8] sm:$0xff] }
  0x34   :  { %352 = vmatpush.msra.mxu1 %v119_v55  ;;  %v241_v0 = vld [vmem:[#allocation5 + $0x4d0] sm:$0xff]  ;;  %387 = vmatpush.msra.mxu3 %v193_v59  ;;  %v239_v4 = vld [vmem:[#allocation5 + $0x4c0] sm:$0xff]  ;;  %v106_v59 = vld [vmem:[#allocation5 + $0x98] sm:$0xff] }
  0x35   :  { %397 = vmatpush.msrb.mxu0 %v245_v56  ;;  %371 = vmatpush.msra.mxu2 %v153_v58  ;;  %v273_v1 = vld [vmem:[#allocation5 + $0x5d0] sm:$0xff]  ;;  %v271_v5 = vld [vmem:[#allocation5 + $0x5c0] sm:$0xff]  ;;  %v148_v58 = vld [vmem:[#allocation5 + $0x1e8] sm:$0xff] }
  0x36   :  { %417 = vmatpush.msrb.mxu1 %v277_v57  ;;  %v309_v2 = vld [vmem:[#allocation5 + $0x6f0] sm:$0xff]  ;;  %388 = vmatpush.msra.mxu3 %v191_v63  ;;  %v307_v6 = vld [vmem:[#allocation5 + $0x6e0] sm:$0xff]  ;;  %v182_v57 = vld [vmem:[#allocation5 + $0x2f8] sm:$0xff] }
  0x37   :  { %398 = vmatpush.msrb.mxu0 %v243_v60  ;;  %v189_v3 = vld [vmem:[#allocation5 + $0x330] sm:$0xff]  ;;  %372 = vmatpush.msra.mxu2 %v151_v62  ;;  %v187_v7 = vld [vmem:[#allocation5 + $0x320] sm:$0xff]  ;;  %v146_v62 = vld [vmem:[#allocation5 + $0x1d8] sm:$0xff] }
  0x38   :  { %418 = vmatpush.msrb.mxu1 %v275_v61  ;;  %v237_v8 = vld [vmem:[#allocation5 + $0x4b0] sm:$0xff]  ;;  %389 = vmatpush.msra.mxu3 %v189_v3  ;;  %v235_v12 = vld [vmem:[#allocation5 + $0x4a0] sm:$0xff]  ;;  %v180_v61 = vld [vmem:[#allocation5 + $0x2e8] sm:$0xff] }
  0x39   :  { %399 = vmatpush.msrb.mxu0 %v241_v0  ;;  %437 = vmatpush.msrb.mxu2 %v309_v2  ;;  %v269_v9 = vld [vmem:[#allocation5 + $0x5b0] sm:$0xff]  ;;  %v267_v13 = vld [vmem:[#allocation5 + $0x5a0] sm:$0xff]  ;;  %v104_v63 = vld [vmem:[#allocation5 + $0x88] sm:$0xff] }
  0x3a   :  { %419 = vmatpush.msrb.mxu1 %v273_v1  ;;  %v305_v10 = vld [vmem:[#allocation5 + $0x6d0] sm:$0xff]  ;;  %390 = vmatpush.msra.mxu3 %v187_v7  ;;  %v303_v14 = vld [vmem:[#allocation5 + $0x6c0] sm:$0xff]  ;;  %v178_v1 = vld [vmem:[#allocation5 + $0x2d8] sm:$0xff] }
  0x3b   :  { %400 = vmatpush.msrb.mxu0 %v239_v4  ;;  %v185_v11 = vld [vmem:[#allocation5 + $0x310] sm:$0xff]  ;;  %438 = vmatpush.msrb.mxu2 %v307_v6  ;;  %v183_v15 = vld [vmem:[#allocation5 + $0x300] sm:$0xff]  ;;  %v896_v2 = vld [vmem:[#allocation2 + $0x30] sm:$0xff] }
  0x3c   :  { %420 = vmatpush.msrb.mxu1 %v271_v5  ;;  %v233_v16 = vld [vmem:[#allocation5 + $0x490] sm:$0xff]  ;;  %391 = vmatpush.msra.mxu3 %v185_v11  ;;  %v231_v20 = vld [vmem:[#allocation5 + $0x480] sm:$0xff]  ;;  %v144_v3 = vld [vmem:[#allocation5 + $0x1c8] sm:$0xff] }
  0x3d   :  { %401 = vmatpush.msrb.mxu0 %v237_v8  ;;  %439 = vmatpush.msrb.mxu2 %v305_v10  ;;  %v265_v17 = vld [vmem:[#allocation5 + $0x590] sm:$0xff]  ;;  %v263_v21 = vld [vmem:[#allocation5 + $0x580] sm:$0xff]  ;;  %v898_v4 = vld [vmem:[#allocation2 + $0x20] sm:$0xff] }
  0x3e   :  { %421 = vmatpush.msrb.mxu1 %v269_v9  ;;  %v301_v18 = vld [vmem:[#allocation5 + $0x6b0] sm:$0xff]  ;;  %392 = vmatpush.msra.mxu3 %v183_v15  ;;  %v299_v22 = vld [vmem:[#allocation5 + $0x6a0] sm:$0xff]  ;;  %v102_v5 = vld [vmem:[#allocation5 + $0x78] sm:$0xff] }
  0x3f   :  { %402 = vmatpush.msrb.mxu0 %v235_v12  ;;  %440 = vmatpush.msrb.mxu2 %v303_v14  ;;  %v229_v24 = vld [vmem:[#allocation5 + $0x470] sm:$0xff]  ;;  %v227_v28 = vld [vmem:[#allocation5 + $0x460] sm:$0xff]  ;;  %v142_v6 = vld [vmem:[#allocation5 + $0x1b8] sm:$0xff] }
  0x40   :  { %422 = vmatpush.msrb.mxu1 %v267_v13  ;;  %v261_v25 = vld [vmem:[#allocation5 + $0x570] sm:$0xff]  ;;  %457 = vmatpush.msrb.mxu3 %v118_v19  ;;  %v259_v29 = vld [vmem:[#allocation5 + $0x560] sm:$0xff]  ;;  %v176_v7 = vld [vmem:[#allocation5 + $0x2c8] sm:$0xff] }
  0x41   :  { %403 = vmatpush.msrb.mxu0 %v233_v16  ;;  %441 = vmatpush.msrb.mxu2 %v301_v18  ;;  %v297_v26 = vld [vmem:[#allocation5 + $0x690] sm:$0xff]  ;;  %v295_v30 = vld [vmem:[#allocation5 + $0x680] sm:$0xff]  ;;  %v100_v9 = vld [vmem:[#allocation5 + $0x68] sm:$0xff] }
  0x42   :  { %423 = vmatpush.msrb.mxu1 %v265_v17  ;;  %458 = vmatpush.msrb.mxu3 %v116_v23  ;;  %v225_v32 = vld [vmem:[#allocation5 + $0x450] sm:$0xff]  ;;  %v223_v36 = vld [vmem:[#allocation5 + $0x440] sm:$0xff]  ;;  %v140_v10 = vld [vmem:[#allocation5 + $0x1a8] sm:$0xff] }
  0x43   :  { %404 = vmatpush.msrb.mxu0 %v231_v20  ;;  %442 = vmatpush.msrb.mxu2 %v299_v22  ;;  %v257_v33 = vld [vmem:[#allocation5 + $0x550] sm:$0xff]  ;;  %v255_v37 = vld [vmem:[#allocation5 + $0x540] sm:$0xff]  ;;  %v174_v11 = vld [vmem:[#allocation5 + $0x2b8] sm:$0xff] }
  0x44   :  { %424 = vmatpush.msrb.mxu1 %v263_v21  ;;  %459 = vmatpush.msrb.mxu3 %v114_v27  ;;  %v293_v34 = vld [vmem:[#allocation5 + $0x670] sm:$0xff]  ;;  %v291_v38 = vld [vmem:[#allocation5 + $0x660] sm:$0xff]  ;;  %v98_v12 = vld [vmem:[#allocation5 + $0x58] sm:$0xff] }
  0x45   :  { %405 = vmatpush.msrb.mxu0 %v229_v24  ;;  %443 = vmatpush.msrb.mxu2 %v297_v26  ;;  %v886_v39 = vld [vmem:[#allocation2 + $0x18] sm:$0xff]  ;;  %v221_v40 = vld [vmem:[#allocation5 + $0x430] sm:$0xff]  ;;  %v214_v13 = vld [vmem:[#allocation5 + $0x3f8] sm:$0xff] }
  0x46   :  { %425 = vmatpush.msrb.mxu1 %v261_v25  ;;  %460 = vmatpush.msrb.mxu3 %v112_v31  ;;  %v253_v41 = vld [vmem:[#allocation5 + $0x530] sm:$0xff]  ;;  %v219_v44 = vld [vmem:[#allocation5 + $0x420] sm:$0xff]  ;;  %v138_v14 = vld [vmem:[#allocation5 + $0x198] sm:$0xff] }
  0x47   :  { %406 = vmatpush.msrb.mxu0 %v227_v28  ;;  %444 = vmatpush.msrb.mxu2 %v295_v30  ;;  %v289_v42 = vld [vmem:[#allocation5 + $0x650] sm:$0xff]  ;;  %v251_v45 = vld [vmem:[#allocation5 + $0x520] sm:$0xff]  ;;  %v172_v15 = vld [vmem:[#allocation5 + $0x2a8] sm:$0xff] }
  0x48   :  { %426 = vmatpush.msrb.mxu1 %v259_v29  ;;  %333 = vmatmul.f32.vlgmr.msra.gmra.mxu0 %v884_v35  ;;  %v287_v46 = vld [vmem:[#allocation5 + $0x640] sm:$0xff]  ;;  %v890_v47 = vld [vmem:[#allocation2 + $0x8] sm:$0xff]  ;;  %v96_v16 = vld [vmem:[#allocation5 + $0x48] sm:$0xff] }
  0x49   :  { %407 = vmatpush.msrb.mxu0 %v225_v32  ;;  %445 = vmatpush.msrb.mxu2 %v293_v34  ;;  %v217_v48 = vld [vmem:[#allocation5 + $0x410] sm:$0xff]  ;;  %v215_v52 = vld [vmem:[#allocation5 + $0x400] sm:$0xff]  ;;  %v212_v17 = vld [vmem:[#allocation5 + $0x3e8] sm:$0xff] }
  0x4a   :  { %427 = vmatpush.msrb.mxu1 %v257_v33  ;;  %393 = vmatmul.f32.vlgmr.msra.gmra.mxu3 %v886_v39  ;;  %v249_v50 = vld [vmem:[#allocation5 + $0x510] sm:$0xff]  ;;  %v247_v55 = vld [vmem:[#allocation5 + $0x500] sm:$0xff]  ;;  %v136_v18 = vld [vmem:[#allocation5 + $0x188] sm:$0xff] }
  0x4b   :  { %408 = vmatpush.msrb.mxu0 %v223_v36  ;;  %446 = vmatpush.msrb.mxu2 %v291_v38  ;;  %v285_v51 = vld [vmem:[#allocation5 + $0x630] sm:$0xff]  ;;  %v283_v56 = vld [vmem:[#allocation5 + $0x620] sm:$0xff]  ;;  %v170_v19 = vld [vmem:[#allocation5 + $0x298] sm:$0xff] }
  0x4c   :  { %428 = vmatpush.msrb.mxu1 %v255_v37  ;;  %461 = vmatpush.msrb.mxu3 %v110_v43  ;;  %v281_v60 = vld [vmem:[#allocation5 + $0x610] sm:$0xff]  ;;  %v279_v0 = vld [vmem:[#allocation5 + $0x600] sm:$0xff]  ;;  %v94_v20 = vld [vmem:[#allocation5 + $0x38] sm:$0xff] }
  0x4d   :  { %409 = vmatpush.msrb.mxu0 %v221_v40  ;;  %447 = vmatpush.msrb.mxu2 %v289_v42  ;;  %v901_v8 = vld [vmem:[#allocation2 + $0x28] sm:$0xff]  ;;  %v210_v21 = vld [vmem:[#allocation5 + $0x3d8] sm:$0xff]  ;;  %v168_v23 = vld [vmem:[#allocation5 + $0x288] sm:$0xff] }
  0x4e   :  { %429 = vmatpush.msrb.mxu1 %v253_v41  ;;  %373 = vmatmul.f32.vlgmr.msra.gmra.mxu2 %v892_v49  ;;  %v134_v22 = vld [vmem:[#allocation5 + $0x178] sm:$0xff]  ;;  %v92_v24 = vld [vmem:[#allocation5 + $0x28] sm:$0xff] }
  0x4f   :  { %410 = vmatpush.msrb.mxu0 %v219_v44  ;;  %448 = vmatpush.msrb.mxu2 %v287_v46  ;;  %v208_v25 = vld [vmem:[#allocation5 + $0x3c8] sm:$0xff]  ;;  %v166_v27 = vld [vmem:[#allocation5 + $0x278] sm:$0xff] }
  0x50   :  { %430 = vmatpush.msrb.mxu1 %v251_v45  ;;  %462 = vmatpush.msrb.mxu3 %v108_v53  ;;  %v132_v26 = vld [vmem:[#allocation5 + $0x168] sm:$0xff]  ;;  %v90_v28 = vld [vmem:[#allocation5 + $0x18] sm:$0xff] }
  0x51   :  { %353 = vmatmul.f32.vlgmr.msra.gmra.mxu1 %v890_v47  ;;  %411 = vmatpush.msrb.mxu0 %v217_v48  ;;  %v206_v29 = vld [vmem:[#allocation5 + $0x3b8] sm:$0xff]  ;;  %v164_v31 = vld [vmem:[#allocation5 + $0x268] sm:$0xff] }
  0x52   :  { %431 = vmatpush.msrb.mxu1 %v249_v50  ;;  %449 = vmatpush.msrb.mxu2 %v285_v51  ;;  %v130_v30 = vld [vmem:[#allocation5 + $0x158] sm:$0xff]  ;;  %v88_v32 = vld [vmem:[#allocation5 + $0x8] sm:$0xff] }
  0x53   :  { %412 = vmatpush.msrb.mxu0 %v215_v52  ;;  %463 = vmatpush.msrb.mxu3 %v106_v59  ;;  %v204_v33 = vld [vmem:[#allocation5 + $0x3a8] sm:$0xff]  ;;  %v162_v36 = vld [vmem:[#allocation5 + $0x258] sm:$0xff] }
  0x54   :  { %432 = vmatpush.msrb.mxu1 %v247_v55  ;;  %450 = vmatpush.msrb.mxu2 %v283_v56  ;;  %v128_v34 = vld [vmem:[#allocation5 + $0x148] sm:$0xff]  ;;  %v246_v37 = vld [vmem:[#allocation5 + $0x4f8] sm:$0xff] }
  0x55   :  { %477 = vmatpush.msra.mxu0 %v150_v54  ;;  %464 = vmatpush.msrb.mxu3 %v104_v63  ;;  %v202_v38 = vld [vmem:[#allocation5 + $0x398] sm:$0xff]  ;;  %v160_v41 = vld [vmem:[#allocation5 + $0x248] sm:$0xff] }
  0x56   :  { %497 = vmatpush.msra.mxu1 %v182_v57  ;;  %451 = vmatpush.msrb.mxu2 %v281_v60  ;;  %v126_v40 = vld [vmem:[#allocation5 + $0x138] sm:$0xff]  ;;  %v244_v42 = vld [vmem:[#allocation5 + $0x4e8] sm:$0xff] }
  0x57   :  { %478 = vmatpush.msra.mxu0 %v148_v58  ;;  %465 = vmatpush.msrb.mxu3 %v102_v5  ;;  %v200_v43 = vld [vmem:[#allocation5 + $0x388] sm:$0xff]  ;;  %v158_v45 = vld [vmem:[#allocation5 + $0x238] sm:$0xff] }
  0x58   :  { %498 = vmatpush.msra.mxu1 %v180_v61  ;;  %452 = vmatpush.msrb.mxu2 %v279_v0  ;;  %v124_v44 = vld [vmem:[#allocation5 + $0x128] sm:$0xff]  ;;  %v242_v46 = vld [vmem:[#allocation5 + $0x4d8] sm:$0xff] }
  0x59   :  { %479 = vmatpush.msra.mxu0 %v146_v62  ;;  %453 = vmatmul.f32.vlgmr.msrb.gmra.mxu2 %v896_v2  ;;  %v198_v48 = vld [vmem:[#allocation5 + $0x378] sm:$0xff]  ;;  %v156_v51 = vld [vmem:[#allocation5 + $0x228] sm:$0xff] }
  0x5a   :  { %499 = vmatpush.msra.mxu1 %v178_v1  ;;  %413 = vmatmul.f32.vlgmr.msrb.gmra.mxu0 %v898_v4  ;;  %v122_v50 = vld [vmem:[#allocation5 + $0x118] sm:$0xff]  ;;  %v240_v52 = vld [vmem:[#allocation5 + $0x4c8] sm:$0xff] }
  0x5b   :  { %480 = vmatpush.msra.mxu0 %v144_v3  ;;  %433 = vmatmul.f32.vlgmr.msrb.gmra.mxu1 %v901_v8  ;;  %v196_v53 = vld [vmem:[#allocation5 + $0x368] sm:$0xff]  ;;  %v154_v55 = vld [vmem:[#allocation5 + $0x218] sm:$0xff] }
  0x5c   :  { %500 = vmatpush.msra.mxu1 %v176_v7  ;;  %466 = vmatpush.msrb.mxu3 %v100_v9  ;;  %v120_v54 = vld [vmem:[#allocation5 + $0x108] sm:$0xff]  ;;  %v238_v56 = vld [vmem:[#allocation5 + $0x4b8] sm:$0xff] }
  0x5d   :  { %481 = vmatpush.msra.mxu0 %v142_v6  ;;  %517 = vmatpush.msra.mxu2 %v214_v13  ;;  %v278_v57 = vld [vmem:[#allocation5 + $0x5f8] sm:$0xff]  ;;  %v152_v58 = vld [vmem:[#allocation5 + $0x208] sm:$0xff] }
  0x5e   :  { %501 = vmatpush.msra.mxu1 %v174_v11  ;;  %467 = vmatpush.msrb.mxu3 %v98_v12  ;;  %v194_v59 = vld [vmem:[#allocation5 + $0x358] sm:$0xff]  ;;  %v236_v60 = vld [vmem:[#allocation5 + $0x4a8] sm:$0xff] }
  0x5f   :  { %482 = vmatpush.msra.mxu0 %v140_v10  ;;  %518 = vmatpush.msra.mxu2 %v212_v17  ;;  %v276_v61 = vld [vmem:[#allocation5 + $0x5e8] sm:$0xff]  ;;  %v310_v62 = vld [vmem:[#allocation5 + $0x6f8] sm:$0xff] }
  0x60   :  { %502 = vmatpush.msra.mxu1 %v172_v15  ;;  %468 = vmatpush.msrb.mxu3 %v96_v16  ;;  %v192_v63 = vld [vmem:[#allocation5 + $0x348] sm:$0xff]  ;;  %v234_v0 = vld [vmem:[#allocation5 + $0x498] sm:$0xff] }
  0x61   :  { %483 = vmatpush.msra.mxu0 %v138_v14  ;;  %519 = vmatpush.msra.mxu2 %v210_v21  ;;  %v274_v1 = vld [vmem:[#allocation5 + $0x5d8] sm:$0xff]  ;;  %v308_v3 = vld [vmem:[#allocation5 + $0x6e8] sm:$0xff] }
  0x62   :  { %503 = vmatpush.msra.mxu1 %v170_v19  ;;  %469 = vmatpush.msrb.mxu3 %v94_v20  ;;  %v190_v5 = vld [vmem:[#allocation5 + $0x338] sm:$0xff]  ;;  %v232_v6 = vld [vmem:[#allocation5 + $0x488] sm:$0xff] }
  0x63   :  { %484 = vmatpush.msra.mxu0 %v136_v18  ;;  %520 = vmatpush.msra.mxu2 %v208_v25  ;;  %v272_v7 = vld [vmem:[#allocation5 + $0x5c8] sm:$0xff]  ;;  %v306_v9 = vld [vmem:[#allocation5 + $0x6d8] sm:$0xff] }
  0x64   :  { %504 = vmatpush.msra.mxu1 %v168_v23  ;;  %470 = vmatpush.msrb.mxu3 %v92_v24  ;;  %v230_v10 = vld [vmem:[#allocation5 + $0x478] sm:$0xff]  ;;  %v304_v12 = vld [vmem:[#allocation5 + $0x6c8] sm:$0xff] }
  0x65   :  { %485 = vmatpush.msra.mxu0 %v134_v22  ;;  %521 = vmatpush.msra.mxu2 %v206_v29  ;;  %v270_v11 = vld [vmem:[#allocation5 + $0x5b8] sm:$0xff]  ;;  %v188_v13 = vld [vmem:[#allocation5 + $0x328] sm:$0xff] }
  0x66   :  { %505 = vmatpush.msra.mxu1 %v166_v27  ;;  %471 = vmatpush.msrb.mxu3 %v90_v28  ;;  %v228_v14 = vld [vmem:[#allocation5 + $0x468] sm:$0xff]  ;;  %v302_v16 = vld [vmem:[#allocation5 + $0x6b8] sm:$0xff] }
  0x67   :  { %486 = vmatpush.msra.mxu0 %v132_v26  ;;  %522 = vmatpush.msra.mxu2 %v204_v33  ;;  %v268_v15 = vld [vmem:[#allocation5 + $0x5a8] sm:$0xff]  ;;  %v186_v17 = vld [vmem:[#allocation5 + $0x318] sm:$0xff] }
  0x68   :  { %506 = vmatpush.msra.mxu1 %v164_v31  ;;  %472 = vmatpush.msrb.mxu3 %v88_v32  ;;  %v226_v18 = vld [vmem:[#allocation5 + $0x458] sm:$0xff]  ;;  %v300_v20 = vld [vmem:[#allocation5 + $0x6a8] sm:$0xff] }
  0x69   :  { %487 = vmatpush.msra.mxu0 %v130_v30  ;;  %523 = vmatpush.msra.mxu2 %v202_v38  ;;  %v266_v19 = vld [vmem:[#allocation5 + $0x598] sm:$0xff]  ;;  %v184_v21 = vld [vmem:[#allocation5 + $0x308] sm:$0xff] }
  0x6a   :  { %507 = vmatpush.msra.mxu1 %v162_v36  ;;  %537 = vmatpush.msra.mxu3 %v246_v37  ;;  %v224_v22 = vld [vmem:[#allocation5 + $0x448] sm:$0xff]  ;;  %v298_v24 = vld [vmem:[#allocation5 + $0x698] sm:$0xff] }
  0x6b   :  { %488 = vmatpush.msra.mxu0 %v128_v34  ;;  %524 = vmatpush.msra.mxu2 %v200_v43  ;;  %v264_v23 = vld [vmem:[#allocation5 + $0x588] sm:$0xff]  ;;  %v262_v25 = vld [vmem:[#allocation5 + $0x578] sm:$0xff] }
  0x6c   :  { %508 = vmatpush.msra.mxu1 %v160_v41  ;;  %538 = vmatpush.msra.mxu3 %v244_v42  ;;  %v296_v26 = vld [vmem:[#allocation5 + $0x688] sm:$0xff]  ;;  %v294_v29 = vld [vmem:[#allocation5 + $0x678] sm:$0xff] }
  0x6d   :  { %489 = vmatpush.msra.mxu0 %v126_v40  ;;  %525 = vmatpush.msra.mxu2 %v198_v48  ;;  %v220_v27 = vld [vmem:[#allocation5 + $0x428] sm:$0xff]  ;;  %v614_v30 = vld [vmem:[#allocation8 + $0x78] sm:$0xff]  ;;  %v613_v34 = vld [vmem:[#allocation8 + $0x70] sm:$0xff] }
  0x6e   :  { %509 = vmatpush.msra.mxu1 %v158_v45  ;;  %539 = vmatpush.msra.mxu3 %v242_v46  ;;  %v260_v28 = vld [vmem:[#allocation5 + $0x568] sm:$0xff]  ;;  %v218_v31 = vld [vmem:[#allocation5 + $0x418] sm:$0xff] }
  0x6f   :  { %490 = vmatpush.msra.mxu0 %v124_v44  ;;  %526 = vmatpush.msra.mxu2 %v196_v53  ;;  %v258_v32 = vld [vmem:[#allocation5 + $0x558] sm:$0xff]  ;;  %v292_v33 = vld [vmem:[#allocation5 + $0x668] sm:$0xff] }
  0x70   :  { %510 = vmatpush.msra.mxu1 %v156_v51  ;;  %540 = vmatpush.msra.mxu3 %v240_v52  ;;  %v216_v36 = vld [vmem:[#allocation5 + $0x408] sm:$0xff]  ;;  %v254_v38 = vld [vmem:[#allocation5 + $0x538] sm:$0xff] }
  0x71   :  { %491 = vmatpush.msra.mxu0 %v122_v50  ;;  %527 = vmatpush.msra.mxu2 %v194_v59  ;;  %v256_v37 = vld [vmem:[#allocation5 + $0x548] sm:$0xff]  ;;  %v286_v42 = vld [vmem:[#allocation5 + $0x638] sm:$0xff] }
  0x72   :  { %511 = vmatpush.msra.mxu1 %v154_v55  ;;  %541 = vmatpush.msra.mxu3 %v238_v56  ;;  %v288_v40 = vld [vmem:[#allocation5 + $0x648] sm:$0xff]  ;;  %v250_v44 = vld [vmem:[#allocation5 + $0x518] sm:$0xff] }
  0x73   :  { %492 = vmatpush.msra.mxu0 %v120_v54  ;;  %528 = vmatpush.msra.mxu2 %v192_v63  ;;  %v612_v41 = vld [vmem:[#allocation8 + $0x68] sm:$0xff]  ;;  %v611_v43 = vld [vmem:[#allocation8 + $0x60] sm:$0xff]  ;;  %v610_v46 = vld [vmem:[#allocation8 + $0x58] sm:$0xff] }
  0x74   :  { %512 = vmatpush.msra.mxu1 %v152_v58  ;;  %542 = vmatpush.msra.mxu3 %v236_v60  ;;  %v284_v45 = vld [vmem:[#allocation5 + $0x628] sm:$0xff]  ;;  %v282_v50 = vld [vmem:[#allocation5 + $0x618] sm:$0xff] }
  0x75   :  { %557 = vmatpush.msrb.mxu0 %v278_v57  ;;  %529 = vmatpush.msra.mxu2 %v190_v5  ;;  %v248_v48 = vld [vmem:[#allocation5 + $0x508] sm:$0xff]  ;;  %v606_v53 = vld [vmem:[#allocation8 + $0x38] sm:$0xff]  ;;  %v605_v54 = vld [vmem:[#allocation8 + $0x30] sm:$0xff] }
  0x76   :  { %577 = vmatpush.msrb.mxu1 %v310_v62  ;;  %543 = vmatpush.msra.mxu3 %v234_v0  ;;  %v280_v51 = vld [vmem:[#allocation5 + $0x608] sm:$0xff]  ;;  %v602_v57 = vld [vmem:[#allocation8 + $0x18] sm:$0xff]  ;;  %v601_v58 = vld [vmem:[#allocation8 + $0x10] sm:$0xff] }
  0x77   :  { %558 = vmatpush.msrb.mxu0 %v276_v61  ;;  %473 = vmatmul.f32.vlgmr.msrb.gmra.mxu3 %v884_v35  ;;  %v222_v35 = vld [vmem:[#allocation5 + $0x438] sm:$0xff]  ;;  %v607_v52 = vld [vmem:[#allocation8 + $0x40] sm:$0xff]  ;;  %v604_v55 = vld [vmem:[#allocation8 + $0x28] sm:$0xff] }
  0x78   :  { %578 = vmatpush.msrb.mxu1 %v308_v3  ;;  %544 = vmatpush.msra.mxu3 %v232_v6  ;;  %v603_v56 = vld [vmem:[#allocation8 + $0x20] sm:$0xff]  ;;  %v629_v60 = vld [vmem:[#allocation8 + $0xf0] sm:$0xff]  ;;  %v628_v61 = vld [vmem:[#allocation8 + $0xe8] sm:$0xff] }
  0x79   :  { %559 = vmatpush.msrb.mxu0 %v274_v1  ;;  %530 = vmatpush.msra.mxu2 %v188_v13  ;;  %v599_v59 = vld [vmem:[#allocation8] sm:$0xff]  ;;  %v311_v62 = vld [vmem:[#allocation7] sm:$0x3]  ;;  %v625_v5 = vld [vmem:[#allocation8 + $0xd0] sm:$0xff] }
  0x7a   :  { %579 = vmatpush.msrb.mxu1 %v306_v9  ;;  %545 = vmatpush.msra.mxu3 %v230_v10  ;;  %v627_v63 = vld [vmem:[#allocation8 + $0xe0] sm:$0xff]  ;;  %v626_v0 = vld [vmem:[#allocation8 + $0xd8] sm:$0xff]  ;;  %v313_v1 = vperm.slane %v311_v62, 0  ;;  %v624_v6 = vld [vmem:[#allocation8 + $0xc8] sm:$0xff] }
  0x7b   :  { %560 = vmatpush.msrb.mxu0 %v272_v7  ;;  %531 = vmatpush.msra.mxu2 %v186_v17 }
  0x7c   :  { %580 = vmatpush.msrb.mxu1 %v304_v12  ;;  %546 = vmatpush.msra.mxu3 %v228_v14 }
  0x7d   :  { %561 = vmatpush.msrb.mxu0 %v270_v11  ;;  %532 = vmatpush.msra.mxu2 %v184_v21  ;;  %v623_v21 = vld [vmem:[#allocation8 + $0xc0] sm:$0xff] }
  0x7e   :  { %581 = vmatpush.msrb.mxu1 %v302_v16  ;;  %547 = vmatpush.msra.mxu3 %v226_v18 }
  0x7f   :  { %562 = vmatpush.msrb.mxu0 %v268_v15  ;;  %533 = vmatmul.f32.vlgmr.msra.gmra.mxu2 %v886_v39  ;;  %v290_v39 = vld [vmem:[#allocation5 + $0x658] sm:$0xff] }
  0x80   :  { %582 = vmatpush.msrb.mxu1 %v300_v20  ;;  %548 = vmatpush.msra.mxu3 %v224_v22 }
  0x81   :  { %563 = vmatpush.msrb.mxu0 %v266_v19  ;;  %635 = vmatpush.msrb.mxu2 %v614_v30  ;;  %v314_v30 = vperm.slane %v311_v62, 1 }
  0x82   :  { %583 = vmatpush.msrb.mxu1 %v298_v24  ;;  %549 = vmatpush.msra.mxu3 %v222_v35  ;;  %v621_v24 = vld [vmem:[#allocation8 + $0xb0] sm:$0xff]  ;;  %v620_v35 = vld [vmem:[#allocation8 + $0xa8] sm:$0xff] }
  0x83   :  { %564 = vmatpush.msrb.mxu0 %v264_v23  ;;  %636 = vmatpush.msrb.mxu2 %v613_v34  ;;  %v622_v23 = vld [vmem:[#allocation8 + $0xb8] sm:$0xff] }
  0x84   :  { %584 = vmatpush.msrb.mxu1 %v296_v26  ;;  %493 = vmatmul.f32.vlgmr.msra.gmra.mxu0 %v890_v47  ;;  %v252_v47 = vld [vmem:[#allocation5 + $0x528] sm:$0xff]  ;;  %v618_v26 = vld [vmem:[#allocation8 + $0x98] sm:$0xff] }
  0x85   :  { %565 = vmatpush.msrb.mxu0 %v262_v25  ;;  %550 = vmatpush.msra.mxu3 %v220_v27  ;;  %v619_v25 = vld [vmem:[#allocation8 + $0xa0] sm:$0xff]  ;;  %v617_v27 = vld [vmem:[#allocation8 + $0x90] sm:$0xff] }
  0x86   :  { %585 = vmatpush.msrb.mxu1 %v294_v29  ;;  %637 = vmatpush.msrb.mxu2 %v612_v41  ;;  %v615_v29 = vld [vmem:[#allocation8 + $0x80] sm:$0xff] }
  0x87   :  { %566 = vmatpush.msrb.mxu0 %v260_v28  ;;  %551 = vmatpush.msra.mxu3 %v218_v31  ;;  %v616_v28 = vld [vmem:[#allocation8 + $0x88] sm:$0xff] }
  0x88   :  { %586 = vmatpush.msrb.mxu1 %v292_v33  ;;  %638 = vmatpush.msrb.mxu2 %v611_v43 }
  0x89   :  { %567 = vmatpush.msrb.mxu0 %v258_v32  ;;  %552 = vmatpush.msra.mxu3 %v216_v36 }
  0x8a   :  { %587 = vmatpush.msrb.mxu1 %v290_v39  ;;  %553 = vmatmul.f32.vlgmr.msra.gmra.mxu3 %v898_v4  ;;  %v609_v4 = vld [vmem:[#allocation8 + $0x50] sm:$0xff] }
  0x8b   :  { %568 = vmatpush.msrb.mxu0 %v256_v37  ;;  %513 = vmatmul.f32.vlgmr.msra.gmra.mxu1 %v892_v49  ;;  %v608_v49 = vld [vmem:[#allocation8 + $0x48] sm:$0xff] }
  0x8c   :  { %588 = vmatpush.msrb.mxu1 %v288_v40  ;;  %639 = vmatpush.msrb.mxu2 %v610_v46  ;;  %v704_v46 = vld [vmem:[%s922_s4] ss:$0 sm:$0xff] }
  0x8d   :  { %569 = vmatpush.msrb.mxu0 %v254_v38 }
  0x8e   :  { %589 = vmatpush.msrb.mxu1 %v286_v42  ;;  %640 = vmatpush.msrb.mxu2 %v609_v4 }
  0x8f   :  { %570 = vmatpush.msrb.mxu0 %v252_v47 }
  0x90   :  { %590 = vmatpush.msrb.mxu1 %v284_v45  ;;  %641 = vmatpush.msrb.mxu2 %v608_v49 }
  0x91   :  { %571 = vmatpush.msrb.mxu0 %v250_v44 }
  0x92   :  { %591 = vmatpush.msrb.mxu1 %v282_v50  ;;  %642 = vmatpush.msrb.mxu2 %v607_v52 }
  0x93   :  { %572 = vmatpush.msrb.mxu0 %v248_v48 }
  0x94   :  { %573 = vmatmul.f32.vlgmr.msrb.gmra.mxu0 %v901_v8  ;;  %592 = vmatpush.msrb.mxu1 %v280_v51  ;;  %v600_v8 = vld [vmem:[#allocation8 + $0x8] sm:$0xff] }
  0x95   :  { %593 = vmatmul.f32.vlgmr.msrb.gmra.mxu1 %v896_v2  ;;  %643 = vmatpush.msrb.mxu2 %v606_v53  ;;  %v630_v2 = vld [vmem:[#allocation8 + $0xf8] sm:$0xff] }
  0x96   :  { %655 = vmatpush.msrb.mxu3 %v630_v2 }
  0x97   :  { %644 = vmatpush.msrb.mxu2 %v605_v54 }
  0x98   :  { %656 = vmatpush.msrb.mxu3 %v629_v60 }
  0x99   :  { %645 = vmatpush.msrb.mxu2 %v604_v55 }
  0x9a   :  { %657 = vmatpush.msrb.mxu3 %v628_v61 }
  0x9b   :  { %646 = vmatpush.msrb.mxu2 %v603_v56 }
  0x9c   :  { %658 = vmatpush.msrb.mxu3 %v627_v63 }
  0x9d   :  { %647 = vmatpush.msrb.mxu2 %v602_v57 }
  0x9e   :  { %659 = vmatpush.msrb.mxu3 %v626_v0 }
  0x9f   :  { %648 = vmatpush.msrb.mxu2 %v601_v58 }
  0xa0   :  { %660 = vmatpush.msrb.mxu3 %v625_v5 }
  0xa1   :  { %649 = vmatpush.msrb.mxu2 %v600_v8 }
  0xa2   :  { %661 = vmatpush.msrb.mxu3 %v624_v6 }
  0xa3   :  { %650 = vmatpush.msrb.mxu2 %v599_v59 }
  0xa4   :  { %662 = vmatpush.msrb.mxu3 %v623_v21 }
  0xa6   :  { %663 = vmatpush.msrb.mxu3 %v622_v23 }
  0xa8   :  { %664 = vmatpush.msrb.mxu3 %v621_v24 }
  0xaa   :  { %665 = vmatpush.msrb.mxu3 %v620_v35 }
  0xac   :  { %666 = vmatpush.msrb.mxu3 %v619_v25 }
  0xae   :  { %667 = vmatpush.msrb.mxu3 %v618_v26 }
  0xb0   :  { %668 = vmatpush.msrb.mxu3 %v617_v27 }
  0xb2   :  { %669 = vmatpush.msrb.mxu3 %v616_v28 }
  0xb4   :  { %670 = vmatpush.msrb.mxu3 %v615_v29 }
  0xc5   :  { %v334_v3 = vpop.f32.mrf.mxu0 }
  0xc6   :  { %v335_v7 = vadd.f32 %v334_v3, %v313_v1 }
  0xcd   :  { %v394_v12 = vpop.f32.mrf.mxu3 }
  0xce   :  { %v354_v9 = vpop.f32.mrf.mxu1 }
  0xcf   :  { %v355_v10 = vadd.f32 %v354_v9, %v335_v7 }
  0xd1   :  { %v374_v11 = vpop.f32.mrf.mxu2 }
  0xd2   :  { %v375_v13 = vadd.f32 %v374_v11, %v355_v10 }
  0xd4   :  { %v395_v14 = vadd.f32 %v394_v12, %v375_v13 }
  0xd7   :  { %v414_v15 = vpop.f32.mrf.mxu0 }
  0xd8   :  { %v415_v16 = vadd.f32 %v414_v15, %v395_v14  ;;  %v434_v17 = vpop.f32.mrf.mxu1 }
  0xda   :  { %v435_v18 = vadd.f32 %v434_v17, %v415_v16 }
  0xdc   :  { %v454_v19 = vpop.f32.mrf.mxu2 }
  0xdd   :  { %v455_v20 = vadd.f32 %v454_v19, %v435_v18 }
  0xdf   :  { %v597_v22 = vmax.f32 %v455_v20, 0.0 }
  0xe1   :  { %651 = vmatmul.f32.vlgmr.msrb.gmra.mxu2 %v597_v22 }
  0xfa   :  { %v474_v31 = vpop.f32.mrf.mxu3 }
  0xfb   :  { %v475_v32 = vadd.f32 %v474_v31, %v314_v30 }
 0x101   :  { %v494_v33 = vpop.f32.mrf.mxu0 }
 0x102   :  { %v495_v34 = vadd.f32 %v494_v33, %v475_v32  ;;  %v534_v37 = vpop.f32.mrf.mxu2 }
 0x108   :  { %v514_v36 = vpop.f32.mrf.mxu1 }
 0x109   :  { %v515_v39 = vadd.f32 %v514_v36, %v495_v34 }
 0x10b   :  { %v535_v38 = vadd.f32 %v534_v37, %v515_v39 }
 0x10d   :  { %v554_v40 = vpop.f32.mrf.mxu3 }
 0x10e   :  { %v555_v41 = vadd.f32 %v554_v40, %v535_v38 }
 0x111   :  { %v574_v47 = vpop.f32.mrf.mxu0 }
 0x112   :  { %v575_v42 = vadd.f32 %v574_v47, %v555_v41  ;;  %v594_v43 = vpop.f32.mrf.mxu1 }
 0x114   :  { %v595_v44 = vadd.f32 %v594_v43, %v575_v42 }
 0x116   :  { %v598_v45 = vmax.f32 %v595_v44, 0.0 }
 0x118   :  { %671 = vmatmul.f32.vlgmr.msrb.gmra.mxu3 %v598_v45 }
 0x164   :  { %v652_v48 = vpop.f32.mrf.mxu2 }
 0x165   :  { %v653_v50 = vadd.f32 %v704_v46, %v652_v48 }
 0x19b   :  { %v672_v4 = vpop.f32.mrf.mxu3 }
 0x19c   :  { %v673_v51 = vadd.f32 %v672_v4, %v653_v50 }
 0x19e   :  { %675 = vst [vmem:[#allocation10] sm:$0xff] %v673_v51 }
 0x19f   :  { %686 = dma.vmem_to_hbm [thread:$0]  %s682_s16, 128, %s684_s19, [#allocation4]  }
 0x1a0   :  { %831 = dma.done.wait [#allocation4], 128  }
 0x1a1   :  { %832 = vsyncadd [#allocation4], 4294967168 }
 0x1a2   :  { %691 = vsyncpa [#allocation3], 1 }
 0x1a3   :  { %692 = vsyncpa [#allocation6], 1 }
 0x1a4   :  { %693 = vsyncpa [#allocation9], 1 }
 0x1a5   :  { %694 = vsyncpa [#allocation4], 1 }

</bundles_post_ra>
